<compile_context>
chip_gen: v7x
topology: tpu7x:2x2x1
jax: 0.10.0
libtpu: 0.0.40
codegen_flags: <defaults>
</compile_context>

<pallas_src>
import functools
import math

import jax
import jax.numpy as jnp
from jax import lax
from jax.experimental import pallas as pl
from jax.experimental.pallas import tpu as pltpu


# ----------------------------------------------------------------------------
# In-register sinusoidal positional encoding for one (block_rows, d_model) tile.
# ----------------------------------------------------------------------------
def _pe_block(x, row0, *, d_model, seq_len):
    shape = x.shape
    r = lax.broadcasted_iota(jnp.int32, shape, 0) + row0          # global row id
    pos = (r % seq_len).astype(jnp.float32)                       # position in seq
    d = lax.broadcasted_iota(jnp.int32, shape, 1)                 # feature index
    odd = d % 2
    # 1 / 10000 ** (2*(d//2) / d_model)  ==  exp(-(d - d%2) * ln(10000) / d_model)
    inv_div = jnp.exp((d - odd).astype(jnp.float32) *
                      (-math.log(10000.0) / d_model))
    ang = pos * inv_div
    pe = jnp.where(odd == 0, jnp.sin(ang), jnp.cos(ang))
    return x + pe


def _posenc_kernel_eval(x_ref, o_ref, *, d_model, seq_len, block_rows):
    row0 = pl.program_id(0) * block_rows
    x = x_ref[...].astype(jnp.float32)
    y = _pe_block(x, row0, d_model=d_model, seq_len=seq_len)
    o_ref[...] = y.astype(o_ref.dtype)


def _posenc_kernel_train(x_ref, bits_ref, o_ref, *, d_model, seq_len, block_rows,
                         keep_threshold, keep_scale):
    row0 = pl.program_id(0) * block_rows
    x = x_ref[...].astype(jnp.float32)
    y = _pe_block(x, row0, d_model=d_model, seq_len=seq_len)
    keep = bits_ref[...] >= jnp.uint32(keep_threshold)            # int threshold
    y = jnp.where(keep, y * keep_scale, 0.0)
    o_ref[...] = y.astype(o_ref.dtype)


def _pick_block_rows(rows, d_model, n_streams):
    """Largest row tile keeping live (double-buffered) VMEM under ~24 MiB."""
    budget = 24 * 1024 * 1024
    per_row = d_model * 4 * 2 * n_streams      # f32/u32, double-buffered streams
    blk = min(rows, 1024, max(8, budget // per_row))
    if blk >= rows:
        return rows                            # full extent: always a legal block
    return max(8, (blk // 8) * 8)              # keep sublane (8) alignment


# ----------------------------------------------------------------------------
# Wrapper:  out = dropout(x + pe[:, :seq, :])
# ----------------------------------------------------------------------------
def positional_encoding(x, *, dropout_p=0.1, training=True, rng_key=None,
                        seq_max_len=5000):
    B, S, D = x.shape
    assert S <= seq_max_len
    rows = B * S
    x2d = x.reshape(rows, D)

    use_dropout = training and dropout_p > 0.0
    n_streams = 3 if use_dropout else 2
    blk = _pick_block_rows(rows, D, n_streams)
    grid = (pl.cdiv(rows, blk),)
    row_spec = pl.BlockSpec((blk, D), lambda i: (i, 0))

    cost = pl.CostEstimate(
        flops=6 * rows * D,
        transcendentals=3 * rows * D,
        bytes_accessed=n_streams * rows * D * 4,
    )
    cparams = pltpu.CompilerParams(
        dimension_semantics=("parallel",),
        vmem_limit_bytes=48 * 1024 * 1024,
    )

    if use_dropout:
        if rng_key is None:
            rng_key = jax.random.PRNGKey(0)
        # TODO(synk): on real TPU hardware the dropout bits could be drawn
        # in-kernel with pltpu.prng_random_bits (saving one HBM stream); they are
        # generated host-side with jax.random so the kernel also lowers under
        # interpret mode.
        bits = jax.random.bits(rng_key, (rows, D), dtype=jnp.uint32)
        keep_threshold = min(int(dropout_p * (1 << 32)), (1 << 32) - 1)
        kernel = functools.partial(
            _posenc_kernel_train, d_model=D, seq_len=S, block_rows=blk,
            keep_threshold=keep_threshold, keep_scale=1.0 / (1.0 - dropout_p))
        out2d = pl.pallas_call(
            kernel,
            out_shape=jax.ShapeDtypeStruct((rows, D), x.dtype),
            grid=grid,
            in_specs=[row_spec, row_spec],
            out_specs=row_spec,
            compiler_params=cparams,
            cost_estimate=cost,
        )(x2d, bits)
    else:
        kernel = functools.partial(
            _posenc_kernel_eval, d_model=D, seq_len=S, block_rows=blk)
        out2d = pl.pallas_call(
            kernel,
            out_shape=jax.ShapeDtypeStruct((rows, D), x.dtype),
            grid=grid,
            in_specs=[row_spec],
            out_specs=row_spec,
            compiler_params=cparams,
            cost_estimate=cost,
        )(x2d)

    return out2d.reshape(B, S, D)


# ----------------------------------------------------------------------------
# Pure-JAX reference PE table (mirrors the PyTorch buffer construction).
# ----------------------------------------------------------------------------
def _ref_pe(seq_len, d_model):
    pos = jnp.arange(seq_len, dtype=jnp.float32)[:, None]
    div_term = 10000.0 ** (jnp.arange(0, d_model, 2, dtype=jnp.float32) / d_model)
    ang = pos / div_term
    pe = jnp.zeros((seq_len, d_model), jnp.float32)
    pe = pe.at[:, 0::2].set(jnp.sin(ang))
    pe = pe.at[:, 1::2].set(jnp.cos(ang))
    return pe


if __name__ == "__main__":
    key = jax.random.PRNGKey(0)
    kx, kd = jax.random.split(key)

    # small shapes; d_model kept a multiple of 128 so the out_spec is lane-dense
    B, S, D = 2, 8, 128
    p = 0.1
    x = jax.random.normal(kx, (B, S, D), dtype=jnp.float32)

    # Eval mode (dropout off): exact check against the PyTorch-style PE table.
    out_eval = positional_encoding(x, dropout_p=p, training=False)
    jax.block_until_ready(out_eval)
    ref_eval = x + _ref_pe(S, D)[None, :, :]
    assert jnp.allclose(out_eval, ref_eval, atol=1e-5, rtol=1e-5), "eval mismatch"

    # Training mode (dropout active): every element must be 0 or (x+pe)/(1-p).
    out_train = positional_encoding(x, dropout_p=p, training=True, rng_key=kd)
    jax.block_until_ready(out_train)
    assert out_train.shape == x.shape and out_train.dtype == x.dtype
    scaled = ref_eval / (1.0 - p)
    ok = jnp.isclose(out_train, 0.0, atol=1e-6) | jnp.isclose(
        out_train, scaled, atol=1e-5, rtol=1e-5)
    assert bool(jnp.all(ok)), "train mismatch"

    print("KERNEL_OK")
</pallas_src>

<mosaic_0001>
module attributes {stable_mosaic.version = 11 : i64} {
  func.func @_posenc_kernel_eval(%arg0: i32, %arg1: memref<16x128xf32, #tpu.memory_space<vmem>>, %arg2: memref<16x128xf32, #tpu.memory_space<vmem>>) attributes {dimension_semantics = [#tpu.dimension_semantics<parallel>], iteration_bounds = array<i64: 1>, scalar_prefetch = 0 : i64, scratch_operands = 0 : i64, tpu.core_type = #tpu.core_type<tc>, window_params = [{transform_indices = @transform_0, window_bounds = array<i64: 16, 128>}, {transform_indices = @transform_1, window_bounds = array<i64: 16, 128>}]} {
    %c16_i32 = arith.constant 16 : i32
    %0 = arith.muli %arg0, %c16_i32 : i32
    %c0 = arith.constant 0 : index
    %c0_0 = arith.constant 0 : index
    %1 = vector.load %arg1[%c0, %c0_0] : memref<16x128xf32, #tpu.memory_space<vmem>>, vector<16x128xf32>
    %2 = tpu.iota {dimensions = array<i32: 0>} : vector<16x128xi32>
    %3 = vector.broadcast %0 : i32 to vector<16x128xi32>
    %4 = arith.addi %2, %3 : vector<16x128xi32>
    %c8_i32 = arith.constant 8 : i32
    %c0_i32 = arith.constant 0 : i32
    %5 = arith.cmpi eq, %c8_i32, %c0_i32 : i32
    %c1_i32 = arith.constant 1 : i32
    %6 = arith.select %5, %c1_i32, %c8_i32 : i32
    %7 = vector.broadcast %6 : i32 to vector<16x128xi32>
    %8 = arith.remsi %4, %7 : vector<16x128xi32>
    %c0_i32_1 = arith.constant 0 : i32
    %9 = vector.broadcast %c0_i32_1 : i32 to vector<16x128xi32>
    %10 = arith.cmpi ne, %8, %9 : vector<16x128xi32>
    %c0_i32_2 = arith.constant 0 : i32
    %11 = vector.broadcast %c0_i32_2 : i32 to vector<16x128xi32>
    %12 = arith.cmpi slt, %8, %11 : vector<16x128xi32>
    %c0_i32_3 = arith.constant 0 : i32
    %13 = arith.cmpi slt, %6, %c0_i32_3 : i32
    %14 = vector.broadcast %13 : i1 to vector<16x128xi1>
    %15 = vector.broadcast %14 : vector<16x128xi1> to vector<16x128xi1>
    %16 = arith.xori %12, %15 : vector<16x128xi1>
    %17 = arith.andi %16, %10 : vector<16x128xi1>
    %18 = vector.broadcast %6 : i32 to vector<16x128xi32>
    %19 = arith.addi %8, %18 : vector<16x128xi32>
    %20 = arith.select %17, %19, %8 : vector<16x128xi1>, vector<16x128xi32>
    %21 = arith.sitofp %20 : vector<16x128xi32> to vector<16x128xf32>
    %22 = tpu.iota {dimensions = array<i32: 1>} : vector<16x128xi32>
    %c2_i32 = arith.constant 2 : i32
    %c0_i32_4 = arith.constant 0 : i32
    %23 = arith.cmpi eq, %c2_i32, %c0_i32_4 : i32
    %c1_i32_5 = arith.constant 1 : i32
    %24 = arith.select %23, %c1_i32_5, %c2_i32 : i32
    %25 = vector.broadcast %24 : i32 to vector<16x128xi32>
    %26 = arith.remsi %22, %25 : vector<16x128xi32>
    %c0_i32_6 = arith.constant 0 : i32
    %27 = vector.broadcast %c0_i32_6 : i32 to vector<16x128xi32>
    %28 = arith.cmpi ne, %26, %27 : vector<16x128xi32>
    %c0_i32_7 = arith.constant 0 : i32
    %29 = vector.broadcast %c0_i32_7 : i32 to vector<16x128xi32>
    %30 = arith.cmpi slt, %26, %29 : vector<16x128xi32>
    %c0_i32_8 = arith.constant 0 : i32
    %31 = arith.cmpi slt, %24, %c0_i32_8 : i32
    %32 = vector.broadcast %31 : i1 to vector<16x128xi1>
    %33 = vector.broadcast %32 : vector<16x128xi1> to vector<16x128xi1>
    %34 = arith.xori %30, %33 : vector<16x128xi1>
    %35 = arith.andi %34, %28 : vector<16x128xi1>
    %36 = vector.broadcast %24 : i32 to vector<16x128xi32>
    %37 = arith.addi %26, %36 : vector<16x128xi32>
    %38 = arith.select %35, %37, %26 : vector<16x128xi1>, vector<16x128xi32>
    %39 = arith.subi %22, %38 : vector<16x128xi32>
    %40 = arith.sitofp %39 : vector<16x128xi32> to vector<16x128xf32>
    %cst = arith.constant -0.0719557852 : f32
    %41 = vector.broadcast %cst : f32 to vector<16x128xf32>
    %42 = arith.mulf %40, %41 : vector<16x128xf32>
    %43 = math.exp %42 : vector<16x128xf32>
    %44 = arith.mulf %21, %43 : vector<16x128xf32>
    %c0_i32_9 = arith.constant 0 : i32
    %45 = vector.broadcast %c0_i32_9 : i32 to vector<16x128xi32>
    %46 = arith.cmpi eq, %38, %45 : vector<16x128xi32>
    %47 = math.sin %44 : vector<16x128xf32>
    %48 = math.cos %44 : vector<16x128xf32>
    %49 = arith.select %46, %47, %48 : vector<16x128xi1>, vector<16x128xf32>
    %50 = arith.addf %1, %49 : vector<16x128xf32>
    %c0_10 = arith.constant 0 : index
    %c0_11 = arith.constant 0 : index
    %51 = vector.load %arg2[%c0_10, %c0_11] : memref<16x128xf32, #tpu.memory_space<vmem>>, vector<16x128xf32>
    tpu.vector_store %arg2[%c0_10, %c0_11], %50 {strides = array<i32>} : memref<16x128xf32, #tpu.memory_space<vmem>>, vector<16x128xf32>,
    return
  }
  func.func @transform_0(%arg0: i32) -> (i32, i32) {
    %c0_i32 = arith.constant 0 : i32
    %c0_i32_0 = arith.constant 0 : i32
    return %arg0, %c0_i32 : i32, i32
  }
  func.func @transform_1(%arg0: i32) -> (i32, i32) {
    %c0_i32 = arith.constant 0 : i32
    %c0_i32_0 = arith.constant 0 : i32
    return %arg0, %c0_i32 : i32, i32
  }
}

</mosaic_0001>

<bundles_post_ra>
// kernel: tpu_custom_call.1
= control target key start
LH: loop header
LB: loop body
LE: loop exit
PB: predicated region body
PF: predicated region fallthrough
CT: control target
= control target key end

     0   :  { %6 = vsyncpa [#allocation3], 0  ;;  %s745_s0 = inlined_call_operand.hbm [shape: f32[16,128], index: 0, kind: input, shape index: {}]   ;;  %s746_s1 = inlined_call_operand.hbm [shape: f32[16,128], index: 1, kind: output, shape index: {}]  }
   0x1   :  { %7 = vsyncpa [#allocation4], 0  ;;  %s609_s6 = smov [#allocation2]   ;;  %s561_s10 = scalar_lea.hbm %s745_s0, 256 }
   0x2   :  { %s13_s7 = sshll.u32 %s609_s6, 4  ;;  %p562_p0 = scmp.ne.s32.totalorder %s745_s0, %s561_s10  ;;  %s14_s7 = int_to_ptr.vmem [resolvable:$true] %s13_s7 }
   0x3   :  { %p565_p1 = scmp.lt.u32.totalorder %s561_s10, %s745_s0 }
   0x5   :  { %p567_p2 = pnand %p565_p1, %p562_p0 }
   0x7   :  { %570 = shalt.err (!%p567_p2)
}
   0x8   :  { %s571_s15 = scalar_lea.vmem %s14_s7, 256  ;;  %p576_p4 = scmp.lt.s32.totalorder %s14_s7, %s14_s7 }
   0x9   :  { %p572_p3 = scmp.ne.s32.totalorder %s14_s7, %s571_s15  ;;  %p577_p5 = scmp.lt.s32.totalorder %s571_s15, %s571_s15 }
   0xb   :  { %p578_p6 = por %p577_p5, %p576_p4 }
   0xd   :  { %p579_p7 = pnand %p578_p6, %p572_p3 }
   0xf   :  { %582 = shalt.err (!%p579_p7)
}
  0x10   :  { %s610_s16 = smov 128   ;;  %s611_s17 = smov 8  }
  0x11   :  { %19 = dma.hbm_to_vmem [thread:$0]  %s745_s0, 256, %s14_s7, [#allocation3], %s610_s16, %s610_s16, %s611_s17  }
  0x12   :  { %605 = dma.done.wait [#allocation3], 256  }
  0x13   :  { %606 = vsyncadd [#allocation3], 4294967040  ;;  %v26_v0 = vlaneseq  ;;  %v612_v38 = vmov 683565275   ;;  %v613_v40 = vmov 2475754826  }
  0x14   :  { %v614_v42 = vmov 2131351028   ;;  %v615_v44 = vmov 2102212464   ;;  %v616_v46 = vmov 920167782  }
  0x15   :  { %v644_v1 = vand.u32 127, %v26_v0  ;;  %v27_v5 = vshrl.u32 %v26_v0, 7  ;;  %v617_v54 = vmov 1326507024   ;;  %s618_s0 = smov [#allocation5]  }
  0x16   :  { %s505_s20 = sshll.u32 %s618_s0, 4  ;;  %s506_s20 = int_to_ptr.vmem [resolvable:$true] %s505_s20 }
  0x17   :  { %v64_v2 = vand.u32 1, %v644_v1  ;;  %v28_v8 = vadd.s32 8, %v27_v5  ;;  %v36_v9 = vand.u32 7, %v27_v5  ;;  %s583_s21 = scalar_lea.vmem %s506_s20, 256  ;;  %p588_p9 = scmp.lt.s32.totalorder %s506_s20, %s506_s20 }
  0x18   :  { %p584_p8 = scmp.ne.s32.totalorder %s506_s20, %s583_s21  ;;  %p589_p10 = scmp.lt.s32.totalorder %s583_s21, %s583_s21 }
  0x19   :  { %v72_v3 = vsub.s32 %v644_v1, %v64_v2  ;;  %v43_v10 = vand.u32 7, %v28_v8  ;;  %v56_v11 = vcvt.s32.f32 %v36_v9 }
  0x1a   :  { %p590_p11 = por %p589_p10, %p588_p9 }
  0x1b   :  { %v73_v4 = vcvt.s32.f32 %v72_v3  ;;  %v57_v12 = vcvt.s32.f32 %v43_v10 }
  0x1c   :  { %p591_p12 = pnand %p590_p11, %p584_p8 }
  0x1d   :  { %v74_v6 = vmul.f32 -0.071955785, %v73_v4 }
  0x1f   :  { %v75_v7 = vmul.f32 1.442695, %v74_v6 }
  0x21   :  { %551 = vpow2.f32 %v75_v7 }
  0x2b   :  { %v552_v13 = vpop.eup %551 }
  0x2c   :  { %v650_v14 = vmul.f32 %v552_v13, %v56_v11  ;;  %v652_v15 = vmul.f32 %v552_v13, %v57_v12 }
  0x2e   :  { %v80_v16 = vand.u32 2147483647, %v650_v14  ;;  %v83_v17 = vand.u32 2139095040, %v650_v14  ;;  %v187_v18 = vand.u32 2139095040, %v652_v15  ;;  %v184_v19 = vand.u32 2147483647, %v652_v15 }
  0x2f   :  { %vm82_vm14 = vcmp.lt.s32.totalorder %v650_v14, 0 }
  0x30   :  { %v84_v20 = vshrl.u32 %v83_v17, 23  ;;  %v87_v21 = vand.u32 8388607, %v80_v16  ;;  %v188_v22 = vshrl.u32 %v187_v18, 23  ;;  %v191_v23 = vand.u32 8388607, %v184_v19 }
  0x31   :  { %vm81_vm15 = vcmp.le.f32.partialorder %v80_v16, 0.7853982 }
  0x32   :  { %v517_v24 = vadd.s32 4294967169, %v84_v20  ;;  %v521_v25 = vadd.s32 4294967169, %v188_v22  ;;  %v88_v27 = vor.u32 8388608, %v87_v21  ;;  %v192_v29 = vor.u32 8388608, %v191_v23 }
  0x34   :  { %v90_v26 = vadd.s32 1, %v517_v24  ;;  %v194_v28 = vadd.s32 1, %v521_v25  ;;  %v662_v34 = vshll.u32 %v88_v27, 8  ;;  %v664_v36 = vshll.u32 %v192_v29, 8 }
  0x36   :  { %vm91_vm0 = vcmp.gt.s32.totalorder %v90_v26, 0  ;;  %vm195_vm1 = vcmp.gt.s32.totalorder %v194_v28, 0 }
  0x37   :  { %v92_v30 = vsel %vm91_vm0, %v90_v26, 0  ;;  %v196_v33 = vsel %vm195_vm1, %v194_v28, 0  ;;  %vm186_vm0 = vcmp.lt.s32.totalorder %v652_v15, 0  ;;  %vm185_vm1 = vcmp.le.f32.partialorder %v184_v19, 0.7853982 }
  0x38   :  { %v93_v31 = vshrl.u32 %v92_v30, 5  ;;  %v94_v32 = vand.u32 31, %v92_v30  ;;  %v198_v35 = vand.u32 31, %v196_v33  ;;  %v666_v48 = vshrl.u32 %v196_v33, 5 }
  0x3a   :  { %v95_v37 = vsub.s32 32, %v94_v32  ;;  %v97_v39 = vshll.u32 %v612_v38, %v94_v32  ;;  %v100_v41 = vshll.u32 %v613_v40, %v94_v32  ;;  %v103_v43 = vshll.u32 %v614_v42, %v94_v32 }
  0x3b   :  { %v106_v45 = vshll.u32 %v615_v44, %v94_v32  ;;  %v109_v47 = vshll.u32 %v616_v46, %v94_v32  ;;  %vm112_vm2 = vcmp.lt.s32.totalorder %v93_v31, 1  ;;  %vm113_vm3 = vcmp.lt.s32.totalorder %v93_v31, 2 }
  0x3c   :  { %v96_v49 = vshrl.u32 %v612_v38, %v95_v37  ;;  %v98_v50 = vshrl.u32 %v613_v40, %v95_v37  ;;  %v101_v51 = vshrl.u32 %v614_v42, %v95_v37  ;;  %v104_v52 = vshrl.u32 %v615_v44, %v95_v37 }
  0x3d   :  { %v107_v53 = vshrl.u32 %v616_v46, %v95_v37  ;;  %v110_v55 = vshrl.u32 %v617_v54, %v95_v37  ;;  %vm115_vm4 = vcmp.lt.s32.totalorder %v93_v31, 4  ;;  %v199_v59 = vsub.s32 32, %v198_v35 }
  0x3e   :  { %v99_v56 = vor.u32 %v98_v50, %v97_v39  ;;  %v102_v57 = vor.u32 %v101_v51, %v100_v41  ;;  %v105_v58 = vor.u32 %v104_v52, %v103_v43  ;;  %vm114_vm5 = vcmp.lt.s32.totalorder %v93_v31, 3 }
  0x3f   :  { %v108_v60 = vor.u32 %v107_v53, %v106_v45  ;;  %v111_v61 = vor.u32 %v110_v55, %v109_v47  ;;  %v201_v62 = vshll.u32 %v612_v38, %v198_v35  ;;  %v204_v8 = vshll.u32 %v613_v40, %v198_v35 }
  0x40   :  { %v116_v63 = vsel %vm112_vm2, %v96_v49, %v99_v56  ;;  %v117_v0 = vsel %vm115_vm4, %v105_v58, 2102212464  ;;  %v120_v3 = vsel %vm112_vm2, %v99_v56, %v102_v57  ;;  %v124_v4 = vsel %vm112_vm2, %v102_v57, %v105_v58 }
  0x41   :  { %v118_v5 = vsel %vm114_vm5, %v102_v57, %v117_v0  ;;  %v121_v6 = vsel %vm115_vm4, %v108_v60, 920167782  ;;  %v125_v7 = vsel %vm115_vm4, %v111_v61, 1326507024  ;;  %v200_v11 = vshrl.u32 %v612_v38, %v199_v59 }
  0x42   :  { %v122_v9 = vsel %vm114_vm5, %v105_v58, %v121_v6  ;;  %v126_v10 = vsel %vm114_vm5, %v108_v60, %v125_v7  ;;  %v202_v12 = vshrl.u32 %v613_v40, %v199_v59  ;;  %v119_v13 = vsel %vm113_vm3, %v116_v63, %v118_v5 }
  0x43   :  { %v123_v17 = vsel %vm113_vm3, %v120_v3, %v122_v9  ;;  %v127_v18 = vsel %vm113_vm3, %v124_v4, %v126_v10  ;;  %v205_v20 = vshrl.u32 %v614_v42, %v199_v59  ;;  %v207_v27 = vshll.u32 %v614_v42, %v198_v35 }
  0x44   :  { %v675_v21 = vmul.u32.u64.low %v662_v34, %v127_v18  ;;  %v676_v22 = vmul.u32.u64.high %v662_v34, %v127_v18, %v675_v21  ;;  %v679_v23 = vmul.u32.u64.low %v662_v34, %v123_v17  ;;  %v680_v24 = vmul.u32.u64.high %v662_v34, %v123_v17, %v679_v23 }
  0x45   :  { %v203_v25 = vor.u32 %v202_v12, %v201_v62  ;;  %v206_v26 = vor.u32 %v205_v20, %v204_v8  ;;  %v208_v28 = vshrl.u32 %v615_v44, %v199_v59  ;;  %v210_v29 = vshll.u32 %v615_v44, %v198_v35 }
  0x46   :  { %v211_v30 = vshrl.u32 %v616_v46, %v199_v59  ;;  %v213_v32 = vshll.u32 %v616_v46, %v198_v35  ;;  %v214_v33 = vshrl.u32 %v617_v54, %v199_v59  ;;  %v135_v31 = vmul.u32 %v662_v34, %v119_v13 }
  0x47   :  { %v209_v37 = vor.u32 %v208_v28, %v207_v27  ;;  %vm216_vm6 = vcmp.lt.s32.totalorder %v666_v48, 1  ;;  %vm217_vm7 = vcmp.lt.s32.totalorder %v666_v48, 2  ;;  %vm137_vm8 = vc.u32 %v676_v22, %v679_v23 }
  0x48   :  { %v138_v38 = vadd.s32 1, %v680_v24  ;;  %v212_v39 = vor.u32 %v211_v30, %v210_v29  ;;  %vm218_vm9 = vcmp.lt.s32.totalorder %v666_v48, 3  ;;  %v215_v40 = vor.u32 %v214_v33, %v213_v32 }
  0x49   :  { %vm219_vm10 = vcmp.lt.s32.totalorder %v666_v48, 4  ;;  %v220_v41 = vsel %vm216_vm6, %v200_v11, %v203_v25  ;;  %v224_v35 = vsel %vm216_vm6, %v203_v25, %v206_v26  ;;  %v228_v44 = vsel %vm216_vm6, %v206_v26, %v209_v37 }
  0x4a   :  { %v139_v42 = vsel %vm137_vm8, %v138_v38, %v680_v24  ;;  %v221_v34 = vsel %vm219_vm10, %v209_v37, 2102212464  ;;  %v225_v43 = vsel %vm219_vm10, %v212_v39, 920167782  ;;  %v229_v49 = vsel %vm219_vm10, %v215_v40, 1326507024 }
  0x4b   :  { %v140_v45 = vadd.s32 %v139_v42, %v135_v31  ;;  %v222_v46 = vsel %vm218_vm9, %v206_v26, %v221_v34  ;;  %v226_v47 = vsel %vm218_vm9, %v209_v37, %v225_v43  ;;  %v230_v52 = vsel %vm218_vm9, %v212_v39, %v229_v49 }
  0x4c   :  { %v223_v50 = vsel %vm217_vm7, %v220_v41, %v222_v46  ;;  %v227_v51 = vsel %vm217_vm7, %v224_v35, %v226_v47  ;;  %v231_v54 = vsel %vm217_vm7, %v228_v44, %v230_v52  ;;  %v136_v11 = vadd.s32 %v679_v23, %v676_v22 }
  0x4d   :  { %v141_v53 = vadd.s32 536870912, %v140_v45  ;;  %v697_v55 = vmul.u32.u64.low %v664_v36, %v227_v51  ;;  %v698_v56 = vmul.u32.u64.high %v664_v36, %v227_v51, %v697_v55  ;;  %v239_v60 = vmul.u32 %v664_v36, %v223_v50 }
  0x4e   :  { %v701_v57 = vmul.u32.u64.low %v664_v36, %v231_v54  ;;  %v702_v58 = vmul.u32.u64.high %v664_v36, %v231_v54, %v701_v57  ;;  %vm172_vm8 = vweird.f32 %v650_v14  ;;  %vm721_vm9 = vcmp.eq.s32.totalorder %v64_v2, 0 }
  0x4f   :  { %v142_v59 = vshrl.u32 %v141_v53, 30  ;;  %v242_v62 = vadd.s32 1, %v698_v56 }
  0x50   :  { %vm241_vm11 = vc.u32 %v702_v58, %v697_v55  ;;  %v240_v32 = vadd.s32 %v697_v55, %v702_v58 }
  0x51   :  { %v143_v61 = vshll.u32 %v142_v59, 30  ;;  %v243_v48 = vsel %vm241_vm11, %v242_v62, %v698_v56  ;;  %v166_v22 = vsub.s32 4, %v142_v59 }
  0x52   :  { %v244_v0 = vadd.s32 %v243_v48, %v239_v60 }
  0x53   :  { %v144_v63 = vsub.s32 %v140_v45, %v143_v61  ;;  %v167_v42 = vsel %vm82_vm14, %v166_v22, %v142_v59 }
  0x54   :  { %v245_v4 = vadd.s32 536870912, %v244_v0  ;;  %v169_v46 = vsel %vm81_vm15, 0, %v167_v42 }
  0x55   :  { %v146_v3 = vsub.s32 0, %v144_v63  ;;  %v173_v52 = vadd.s32 3, %v169_v46  ;;  %v381_v56 = vand.u32 3, %v169_v46 }
  0x56   :  { %v246_v6 = vshrl.u32 %v245_v4, 30 }
  0x57   :  { %v518_v5 = vmin.u32 %v146_v3, %v144_v63  ;;  %v174_v55 = vand.u32 3, %v173_v52  ;;  %vm386_vm3 = vcmp.eq.s32.totalorder %v381_v56, 2  ;;  %vm383_vm5 = vcmp.eq.s32.totalorder %v381_v56, 0 }
  0x58   :  { %v247_v8 = vshll.u32 %v246_v6, 30  ;;  %v270_v51 = vsub.s32 4, %v246_v6  ;;  %vm382_vm7 = vcmp.lt.s32.totalorder %v381_v56, 2 }
  0x59   :  { %v148_v7 = vclz %v518_v5  ;;  %vm179_vm2 = vcmp.eq.s32.totalorder %v174_v55, 2  ;;  %vm176_vm4 = vcmp.eq.s32.totalorder %v174_v55, 0  ;;  %vm175_vm6 = vcmp.lt.s32.totalorder %v174_v55, 2 }
  0x5a   :  { %v248_v10 = vsub.s32 %v244_v0, %v247_v8  ;;  %v271_v54 = vsel %vm186_vm0, %v270_v51, %v246_v6  ;;  %v24_v6 = vld [vmem:[#allocation2] sm:$0xff] }
  0x5b   :  { %v519_v9 = vadd.s32 4294967294, %v148_v7  ;;  %v273_v59 = vsel %vm185_vm1, 0, %v271_v54 }
  0x5c   :  { %v250_v12 = vsub.s32 0, %v248_v10 }
  0x5d   :  { %vm520_vm12 = vcmp.lt.s32.totalorder %v519_v9, 0 }
  0x5e   :  { %v151_v36 = vsel %vm520_vm12, 0, %v519_v9  ;;  %v522_v20 = vmin.u32 %v250_v12, %v248_v10 }
  0x5f   :  { %v152_v13 = vsub.s32 32, %v151_v36  ;;  %v153_v17 = vshll.u32 %v144_v63, %v151_v36  ;;  %v156_v18 = vsub.s32 4294967266, %v151_v36  ;;  %v277_v63 = vadd.s32 3, %v273_v59 }
  0x60   :  { %v252_v25 = vclz %v522_v20 }
  0x61   :  { %v154_v21 = vshrl.u32 %v136_v11, %v152_v13  ;;  %v157_v24 = vadd.s32 127, %v156_v18  ;;  %v278_v9 = vand.u32 3, %v277_v63 }
  0x62   :  { %v523_v28 = vadd.s32 4294967294, %v252_v25  ;;  %v25_v25 = vld [vmem:[#allocation2 + $0x8] sm:$0xff] }
  0x63   :  { %v155_v26 = vor.u32 %v154_v21, %v153_v17  ;;  %v158_v27 = vshll.u32 %v157_v24, 23  ;;  %vm283_vm10 = vcmp.eq.s32.totalorder %v278_v9, 2  ;;  %vm280_vm12 = vcmp.eq.s32.totalorder %v278_v9, 0 }
  0x64   :  { %vm524_vm13 = vcmp.lt.s32.totalorder %v523_v28, 0 }
  0x65   :  { %v159_v29 = vor.u32 4788187, %v158_v27  ;;  %v162_v30 = vcvt.s32.f32 %v155_v26  ;;  %v255_v23 = vsel %vm524_vm13, 0, %v523_v28 }
  0x66   :  { %v256_v31 = vsub.s32 32, %v255_v23  ;;  %v257_v37 = vshll.u32 %v248_v10, %v255_v23  ;;  %v260_v38 = vsub.s32 4294967266, %v255_v23  ;;  %v484_v10 = vand.u32 3, %v273_v59 }
  0x67   :  { %v160_v33 = vand.u32 2147483647, %v159_v29 }
  0x68   :  { %v258_v40 = vshrl.u32 %v240_v32, %v256_v31  ;;  %v261_v41 = vadd.s32 127, %v260_v38  ;;  %vm489_vm11 = vcmp.eq.s32.totalorder %v484_v10, 2  ;;  %vm486_vm13 = vcmp.eq.s32.totalorder %v484_v10, 0 }
  0x69   :  { %v163_v39 = vmul.f32 %v162_v30, %v160_v33 }
  0x6a   :  { %v259_v34 = vor.u32 %v258_v40, %v257_v37  ;;  %v262_v43 = vshll.u32 %v261_v41, 23 }
  0x6b   :  { %v164_v35 = vxor.u32 2147483648, %v163_v39 }
  0x6c   :  { %v263_v47 = vor.u32 4788187, %v262_v43  ;;  %v266_v49 = vcvt.s32.f32 %v259_v34 }
  0x6d   :  { %v165_v44 = vsel %vm82_vm14, %v164_v35, %v163_v39  ;;  %vm279_vm14 = vcmp.lt.s32.totalorder %v278_v9, 2 }
  0x6e   :  { %v168_v45 = vsel %vm81_vm15, %v650_v14, %v165_v44  ;;  %v264_v50 = vand.u32 2147483647, %v263_v47  ;;  %vm485_vm15 = vcmp.lt.s32.totalorder %v484_v10, 2 }
  0x6f   :  { %553 = vcosq.f32 %v168_v45 }
  0x70   :  { %555 = vsinq.f32 %v168_v45  ;;  %v267_v53 = vmul.f32 %v266_v49, %v264_v50 }
  0x72   :  { %v268_v16 = vxor.u32 2147483648, %v267_v53 }
  0x74   :  { %v269_v57 = vsel %vm186_vm0, %v268_v16, %v267_v53  ;;  %vm276_vm0 = vweird.f32 %v652_v15 }
  0x75   :  { %v272_v58 = vsel %vm185_vm1, %v652_v15, %v269_v57 }
  0x76   :  { %557 = vcosq.f32 %v272_v58 }
  0x77   :  { %559 = vsinq.f32 %v272_v58 }
  0x79   :  { %v554_v60 = vpop.eup %553 }
  0x7a   :  { %v556_v61 = vpop.eup %555  ;;  %v180_v62 = vxor.u32 2147483648, %v554_v60 }
  0x7b   :  { %v177_v19 = vxor.u32 2147483648, %v556_v61 }
  0x7c   :  { %v181_v48 = vsel %vm179_vm2, %v180_v62, %v556_v61  ;;  %v388_v0 = vsel %vm386_vm3, %v180_v62, %v556_v61 }
  0x7d   :  { %v178_v4 = vsel %vm176_vm4, %v554_v60, %v177_v19  ;;  %v385_v5 = vsel %vm383_vm5, %v554_v60, %v177_v19 }
  0x7e   :  { %v182_v7 = vsel %vm175_vm6, %v178_v4, %v181_v48  ;;  %v389_v8 = vsel %vm382_vm7, %v385_v5, %v388_v0 }
  0x7f   :  { %v183_v11 = vsel %vm172_vm8, nan, %v182_v7  ;;  %v390_v36 = vsel %vm172_vm8, nan, %v389_v8 }
  0x80   :  { %v494_v14 = vsel %vm721_vm9, %v183_v11, %v390_v36  ;;  %v558_v13 = vpop.eup %557 }
  0x81   :  { %v496_v12 = vadd.f32 %v494_v14, %v24_v6  ;;  %v560_v1 = vpop.eup %559  ;;  %v284_v2 = vxor.u32 2147483648, %v558_v13 }
  0x82   :  { %v281_v17 = vxor.u32 2147483648, %v560_v1 }
  0x83   :  { %498 = vst [vmem:[#allocation5] sm:$0xff] %v496_v12  ;;  %v285_v18 = vsel %vm283_vm10, %v284_v2, %v560_v1  ;;  %v491_v20 = vsel %vm489_vm11, %v284_v2, %v560_v1 }
  0x84   :  { %v282_v21 = vsel %vm280_vm12, %v558_v13, %v281_v17  ;;  %v488_v24 = vsel %vm486_vm13, %v558_v13, %v281_v17 }
  0x85   :  { %v286_v26 = vsel %vm279_vm14, %v282_v21, %v285_v18  ;;  %v492_v27 = vsel %vm485_vm15, %v488_v24, %v491_v20 }
  0x86   :  { %v287_v28 = vsel %vm276_vm0, nan, %v286_v26  ;;  %v493_v29 = vsel %vm276_vm0, nan, %v492_v27 }
  0x87   :  { %v495_v30 = vsel %vm721_vm9, %v287_v28, %v493_v29 }
  0x88   :  { %v497_v32 = vadd.f32 %v495_v30, %v25_v25 }
  0x8a   :  { %499 = vst [vmem:[#allocation5 + $0x8] sm:$0xff] %v497_v32 }
  0x8b   :  { %594 = shalt.err (!%p591_p12)
}
  0x8c   :  { %s595_s24 = scalar_lea.hbm %s746_s1, 256 }
  0x8d   :  { %p596_p13 = scmp.ne.s32.totalorder %s746_s1, %s595_s24  ;;  %p599_p0 = scmp.lt.u32.totalorder %s595_s24, %s746_s1 }
  0x8f   :  { %p601_p1 = pnand %p599_p0, %p596_p13 }
  0x91   :  { %604 = shalt.err (!%p601_p1)
}
  0x92   :  { %511 = dma.vmem_to_hbm [thread:$0]  %s506_s20, 256, %s746_s1, [#allocation4], %s610_s16, %s610_s16, %s611_s17  }
  0x93   :  { %607 = dma.done.wait [#allocation4], 256  }
  0x94   :  { %608 = vsyncadd [#allocation4], 4294967040 }
  0x95   :  { %515 = vsyncpa [#allocation3], 1 }
  0x96   :  { %516 = vsyncpa [#allocation4], 1 }

</bundles_post_ra>
